<compile_context>
chip_gen: v6e
topology: v6e:2x2x1
jax: 0.10.0
libtpu: 0.0.40
codegen_flags: <defaults>
</compile_context>

<pallas_src>
from functools import partial

import jax
import jax.numpy as jnp
from jax import lax
from jax.experimental import pallas as pl
from jax.experimental.pallas import tpu as pltpu


_BLOCK_BUDGET_BYTES = 4 * 1024 * 1024   # per-block tile budget (HBM-bound => bigger is better)
_VMEM_LIMIT_BYTES = 40 * 1024 * 1024    # covers worst case: 6 resident blocks (2-read mixup)


# --------------------------------------------------------------------------------------
# tiling plans (all static / trace-time Python)
# --------------------------------------------------------------------------------------

def _divisor_tile(T, cap):
    """Largest multiple of 128 <= cap that divides T exactly, or None."""
    tt = (min(cap, T) // 128) * 128
    while tt >= 128:
        if T % tt == 0:
            return tt
        tt -= 128
    return None


def _plan_mix_tiling(B, F, T, itemsize, budget):
    """(Tt, t_tiles, use_two_read) for the mixup kernels."""
    row_bytes = F * itemsize
    if T * row_bytes <= budget:
        # Whole T fits one block.  If B is big enough, split T so the "parallel" T axis has
        # >= 2 tiles (v7x megacore) while keeping the 1R/1W carry variant; otherwise fall back
        # to the fully-parallel two-read variant.
        if B > 2 and T >= 256:
            tt = _divisor_tile(T, T // 2)
            if tt is not None:
                return tt, T // tt, False
        return T, 1, True
    max_tt = max(128, (budget // row_bytes) // 128 * 128)
    tt = _divisor_tile(T, max_tt)           # prefer tiles that divide T (no ragged stores)
    if tt is None:
        tt = min(max_tt, T)                 # rare: T not a multiple of 128
    t_tiles = pl.cdiv(T, tt)
    return tt, t_tiles, (t_tiles == 1 or B <= 2)


def _plan_mask_tiling(B, F, T, itemsize, budget):
    """(Bb, Tt, n_batch_blocks, t_tiles) for the mask-only kernel."""
    row_bytes = F * itemsize
    if T * row_bytes <= budget:
        Tt, t_tiles = T, 1
        Bb = max(1, min(B, budget // max(1, T * row_bytes)))
        if B >= 2:
            Bb = min(Bb, max(1, B // 2))    # keep >= 2 blocks total for v7x megacore
        while Bb > 1 and B % Bb != 0:       # keep batch blocks un-ragged
            Bb -= 1
    else:
        max_tt = max(128, (budget // row_bytes) // 128 * 128)
        Tt = _divisor_tile(T, max_tt) or min(max_tt, T)
        t_tiles = pl.cdiv(T, Tt)
        Bb = 1
    return Bb, Tt, B // Bb, t_tiles


# --------------------------------------------------------------------------------------
# kernels
# --------------------------------------------------------------------------------------

def _row_mask(b, nt, nf, ts_ref, tw_ref, fs_ref, fw_ref, t_idx, f_idx):
    """(F, Tt) boolean zero-mask for batch row `b` from small per-axis vectors.

    ts/tw/fs/fw are flattened 1-D SMEM tables indexed as [b * n_masks + m]; width 0 = no mask.
    t_idx: (1, Tt) global time indices of this T block; f_idx: (F, 1) freq indices.
    """
    tmask = jnp.zeros(t_idx.shape, jnp.bool_)
    for m in range(nt):                      # small static unrolled loop
        start = ts_ref[b * nt + m]
        width = tw_ref[b * nt + m]
        tmask = tmask | ((t_idx >= start) & (t_idx < start + width))
    fmask = jnp.zeros(f_idx.shape, jnp.bool_)
    for m in range(nf):
        start = fs_ref[b * nf + m]
        width = fw_ref[b * nf + m]
        fmask = fmask | ((f_idx >= start) & (f_idx < start + width))
    return jnp.logical_or(tmask, fmask)      # broadcasts to (F, Tt)


def _mask_only_kernel(nt, nf, Bb, ts_ref, tw_ref, fs_ref, fw_ref, spec_ref, out_ref):
    """Zero time/freq masking only: (Bb, F, Tt) block, 1 read + 1 write, fully parallel."""
    b0 = pl.program_id(0) * Bb
    t_blk = pl.program_id(1)
    _, F, Tt = out_ref.shape
    t_idx = lax.broadcasted_iota(jnp.int32, (1, Tt), 1) + t_blk * Tt
    f_idx = lax.broadcasted_iota(jnp.int32, (F, 1), 0)
    for bi in range(Bb):                     # static unroll over packed batch rows
        row = spec_ref[bi]                   # (F, Tt)
        m = _row_mask(b0 + bi, nt, nf, ts_ref, tw_ref, fs_ref, fw_ref, t_idx, f_idx)
        out_ref[bi] = jnp.where(m, jnp.zeros((), row.dtype), row)


def _mix_two_read_kernel(nt, nf, do_mask, *args):
    """Fully-parallel MixUp: reads spec[b] and spec[(b-1)%B] directly, optional masking."""
    if do_mask:
        lam_ref, ts_ref, tw_ref, fs_ref, fw_ref, spec_ref, roll_ref, out_ref = args
    else:
        lam_ref, spec_ref, roll_ref, out_ref = args
        ts_ref = tw_ref = fs_ref = fw_ref = None
    b = pl.program_id(0)
    t_blk = pl.program_id(1)
    s = spec_ref[0]                          # (F, Tt)
    r = roll_ref[0]                          # spec[(b-1) % B]
    lam = lam_ref[0].astype(s.dtype)         # cast once; compute stays in spec dtype
    mixed = r + lam * (s - r)                # == lam*s + (1-lam)*r
    if do_mask:
        F, Tt = s.shape
        t_idx = lax.broadcasted_iota(jnp.int32, (1, Tt), 1) + t_blk * Tt
        f_idx = lax.broadcasted_iota(jnp.int32, (F, 1), 0)
        m = _row_mask(b, nt, nf, ts_ref, tw_ref, fs_ref, fw_ref, t_idx, f_idx)
        mixed = jnp.where(m, jnp.zeros((), s.dtype), mixed)
    out_ref[0] = mixed


def _mix_carry_kernel(nt, nf, do_mask, B, *args):
    """MixUp with a VMEM carry of the previous batch tile (1 HBM read per element).

    Grid is (t_tiles, B+1); the inner (batch) axis is sequential ("arbitrary").
    At inner step g the input BlockSpec provides spec[(g-1) % B]:
      g == 0 : prime the carry with spec[B-1] (wrap element), no output.
      g >= 1 : output batch b = g-1 from s = spec[b] and r = spec[(b-1)%B] (carried in VMEM).
    NOTE: the output BlockSpec maps g=0 and g=1 to the same block index, so the (uninitialized)
    output buffer is never written back before g=1 fully overwrites it.
    """
    if do_mask:
        lam_ref, ts_ref, tw_ref, fs_ref, fw_ref, spec_ref, out_ref, carry_ref = args
    else:
        lam_ref, spec_ref, out_ref, carry_ref = args
        ts_ref = tw_ref = fs_ref = fw_ref = None
    t_blk = pl.program_id(0)
    g = pl.program_id(1)
    s = spec_ref[0]                          # (F, Tt) == spec[(g-1) % B]

    @pl.when(g > 0)
    def _():
        b = g - 1
        lam = lam_ref[0].astype(s.dtype)
        r = carry_ref[0]                     # spec[(b-1) % B]
        mixed = r + lam * (s - r)
        if do_mask:
            F, Tt = s.shape
            t_idx = lax.broadcasted_iota(jnp.int32, (1, Tt), 1) + t_blk * Tt
            f_idx = lax.broadcasted_iota(jnp.int32, (F, 1), 0)
            m = _row_mask(b, nt, nf, ts_ref, tw_ref, fs_ref, fw_ref, t_idx, f_idx)
            mixed = jnp.where(m, jnp.zeros((), s.dtype), mixed)
        out_ref[0] = mixed

    @pl.when(g < B)                          # last step's carry is never consumed
    def _():
        carry_ref[0] = s


# --------------------------------------------------------------------------------------
# forward
# --------------------------------------------------------------------------------------

def augment_forward(spec, y, key, cfg, *, t_budget_bytes=_BLOCK_BUDGET_BYTES, reference=False):
    """Forward pass of AugmentLayer: (spec, y) -> (augmented spec, mixed one-hot y).

    `reference=True` computes the spec path with plain jnp (same sampled randomness) for
    correctness checks.
    """
    B, F, T = spec.shape
    C = cfg["num_classes"]
    aug = cfg["augment"]
    nt = max(1, int(aug["n_time_masks"]))
    nf = max(1, int(aug["n_freq_masks"]))

    k_mix_p, k_lam, k_mask_p, k_tw, k_ts, k_fw, k_fs = jax.random.split(key, 7)

    # ---- host-side randomness (glue) ----
    target = jax.nn.one_hot(y, C, dtype=spec.dtype)
    apply_mix = jax.random.uniform(k_mix_p) < aug["mixup_p"]
    lam_beta = jax.random.beta(k_lam, aug["mixup_alpha"], aug["mixup_alpha"])
    # lam == 1.0  <=>  mixup skipped (identity blend), matching the torch early return.
    lam = jnp.where(apply_mix, lam_beta, 1.0).astype(jnp.float32).reshape(1)

    apply_mask = jax.random.uniform(k_mask_p) < aug["time_freq_mask_p"]

    def _sample_axis(axis_len, n_cfg, n_eff, param, kw, ks):
        # torchaudio-style: width in [0, param), clamped to the axis; start in [0, len-width].
        if n_cfg <= 0 or param <= 0:
            w = jnp.zeros((B, n_eff), jnp.int32)
        else:
            w = jax.random.randint(kw, (B, n_eff), 0, max(1, int(param)))
            w = jnp.minimum(w, axis_len)
        w = jnp.where(apply_mask, w, 0).astype(jnp.int32)     # width 0 => no mask
        s = jax.random.randint(ks, (B, n_eff), 0, jnp.maximum(axis_len - w, 0) + 1)
        return w, s.astype(jnp.int32)

    tw2, ts2 = _sample_axis(T, aug["n_time_masks"], nt, aug["time_mask_param"], k_tw, k_ts)
    fw2, fs2 = _sample_axis(F, aug["n_freq_masks"], nf, aug["freq_mask_param"], k_fw, k_fs)
    # flatten to 1-D for SMEM (avoids 2-D SMEM lane padding)
    tw, ts = tw2.reshape(-1), ts2.reshape(-1)
    fw, fs = fw2.reshape(-1), fs2.reshape(-1)

    if reference:
        # ---- pure-jnp reference of the spec path (same sampled randomness) ----
        lam_s = lam[0].astype(spec.dtype)
        mixed = lam_s * spec + (1.0 - lam_s) * jnp.roll(spec, 1, axis=0)
        t_idx = jnp.arange(T)[None, None, :]
        tmask = jnp.any((t_idx >= ts2[:, :, None]) & (t_idx < (ts2 + tw2)[:, :, None]), axis=1)
        f_idx = jnp.arange(F)[None, None, :]
        fmask = jnp.any((f_idx >= fs2[:, :, None]) & (f_idx < (fs2 + fw2)[:, :, None]), axis=1)
        mask = tmask[:, None, :] | fmask[:, :, None]
        spec_out = jnp.where(mask, jnp.zeros((), spec.dtype), mixed).astype(spec.dtype)
    else:
        itemsize = spec.dtype.itemsize
        Bb, Tt_m, n_bblocks, t_tiles_m = _plan_mask_tiling(B, F, T, itemsize, t_budget_bytes)
        Tt_x, t_tiles_x, use_two_read = _plan_mix_tiling(B, F, T, itemsize, t_budget_bytes)

        par_params = pltpu.CompilerParams(
            dimension_semantics=("parallel", "parallel"),
            vmem_limit_bytes=_VMEM_LIMIT_BYTES)

        def _identity():
            return spec

        def _mask_only():
            return pl.pallas_call(
                partial(_mask_only_kernel, nt, nf, Bb),
                out_shape=jax.ShapeDtypeStruct((B, F, T), spec.dtype),
                grid_spec=pltpu.PrefetchScalarGridSpec(
                    num_scalar_prefetch=4,
                    grid=(n_bblocks, t_tiles_m),
                    in_specs=[pl.BlockSpec((Bb, F, Tt_m), lambda bb, t, *_: (bb, 0, t))],
                    out_specs=pl.BlockSpec((Bb, F, Tt_m), lambda bb, t, *_: (bb, 0, t)),
                ),
                # spec = operand 4 (after the 4 scalar-prefetch tables); in/out blocks are
                # identical so aliasing is hazard-free.
                input_output_aliases={4: 0},
                compiler_params=par_params,
            )(ts, tw, fs, fw, spec)

        def _make_mix(do_mask):
            # lam is a (1,) float32 scalar-prefetch operand (accepted by current lowering;
            # if a future version rejects non-int32 prefetch, move it to an SMEM BlockSpec).
            if use_two_read:
                def call():
                    nsp = 5 if do_mask else 1
                    args = (lam, ts, tw, fs, fw, spec, spec) if do_mask else (lam, spec, spec)
                    return pl.pallas_call(
                        partial(_mix_two_read_kernel, nt, nf, do_mask),
                        out_shape=jax.ShapeDtypeStruct((B, F, T), spec.dtype),
                        grid_spec=pltpu.PrefetchScalarGridSpec(
                            num_scalar_prefetch=nsp,
                            grid=(B, t_tiles_x),
                            in_specs=[
                                pl.BlockSpec((1, F, Tt_x), lambda b, t, *_: (b, 0, t)),
                                pl.BlockSpec((1, F, Tt_x),
                                             lambda b, t, *_: ((b + B - 1) % B, 0, t)),
                            ],
                            out_specs=pl.BlockSpec((1, F, Tt_x), lambda b, t, *_: (b, 0, t)),
                        ),
                        compiler_params=par_params,
                    )(*args)
            else:
                def call():
                    nsp = 5 if do_mask else 1
                    args = (lam, ts, tw, fs, fw, spec) if do_mask else (lam, spec)
                    return pl.pallas_call(
                        partial(_mix_carry_kernel, nt, nf, do_mask, B),
                        out_shape=jax.ShapeDtypeStruct((B, F, T), spec.dtype),
                        grid_spec=pltpu.PrefetchScalarGridSpec(
                            num_scalar_prefetch=nsp,
                            grid=(t_tiles_x, B + 1),
                            in_specs=[pl.BlockSpec(
                                (1, F, Tt_x),
                                lambda t, g, *_: ((g + B - 1) % B, 0, t))],
                            out_specs=pl.BlockSpec(
                                (1, F, Tt_x),
                                lambda t, g, *_: (jnp.maximum(g - 1, 0), 0, t)),
                            scratch_shapes=[pltpu.VMEM((1, F, Tt_x), spec.dtype)],
                        ),
                        compiler_params=pltpu.CompilerParams(
                            # T-tile axis parallel (v7x megacore); batch carry axis sequential
                            dimension_semantics=("parallel", "arbitrary"),
                            vmem_limit_bytes=_VMEM_LIMIT_BYTES),
                    )(*args)
            return call

        branch = apply_mix.astype(jnp.int32) * 2 + apply_mask.astype(jnp.int32)
        spec_out = lax.switch(branch,
                              (_identity, _mask_only, _make_mix(False), _make_mix(True)))

    # ---- target mixing: tiny (B, C), plain XLA (a pallas_call here is pure overhead) ----
    lam_t = lam[0].astype(target.dtype)
    target_rolled = jnp.roll(target, 1, axis=0)
    target_out = lam_t * target + (1.0 - lam_t) * target_rolled

    return spec_out, target_out


# --------------------------------------------------------------------------------------
# demo / self-test
# --------------------------------------------------------------------------------------

if __name__ == "__main__":
    base_aug = dict(mixup_alpha=1.0, n_time_masks=2, time_mask_param=16,
                    n_freq_masks=2, freq_mask_param=4)

    key = jax.random.PRNGKey(0)
    k_spec, k_y, k_aug = jax.random.split(key, 3)

    def run(cfg, spec, y, budget=_BLOCK_BUDGET_BYTES):
        out = jax.jit(lambda s, t, k: augment_forward(s, t, k, cfg,
                                                      t_budget_bytes=budget))(spec, y, k_aug)
        ref = jax.jit(lambda s, t, k: augment_forward(s, t, k, cfg, t_budget_bytes=budget,
                                                      reference=True))(spec, y, k_aug)
        jax.block_until_ready((out, ref))
        return out, ref

    # Case 1: small shape, mixup+mask both firing -> fully-parallel two-read mix kernel.
    cfg1 = {"num_classes": 4, "augment": dict(base_aug, mixup_p=1.0, time_freq_mask_p=1.0)}
    B, F, T = 2, 16, 128
    spec = jax.random.normal(k_spec, (B, F, T), dtype=jnp.float32)
    y = jax.random.randint(k_y, (B,), 0, cfg1["num_classes"])
    (s1, y1), (s1r, y1r) = run(cfg1, spec, y)
    assert s1.shape == (B, F, T) and s1.dtype == spec.dtype
    assert y1.shape == (B, cfg1["num_classes"]) and y1.dtype == spec.dtype
    assert bool(jnp.allclose(s1, s1r, atol=1e-5, rtol=1e-5))
    assert bool(jnp.allclose(y1, y1r, atol=1e-6))

    # Case 2: mixup off, masking on -> batch-packed mask-only kernel (Bb > 1).
    cfg2 = {"num_classes": 4, "augment": dict(base_aug, mixup_p=0.0, time_freq_mask_p=1.0)}
    B2 = 8
    spec2 = jax.random.normal(k_spec, (B2, F, T), dtype=jnp.float32)
    y2 = jax.random.randint(k_y, (B2,), 0, cfg2["num_classes"])
    (s2, t2), (s2r, t2r) = run(cfg2, spec2, y2)
    assert bool(jnp.allclose(s2, s2r, atol=1e-5, rtol=1e-5))
    assert bool(jnp.allclose(t2, jax.nn.one_hot(y2, 4, dtype=spec2.dtype)))  # no mixup

    # Case 3: tiny artificial budget forces t_tiles >= 2 -> VMEM-carry mixup kernel.
    B3, F3, T3 = 4, 16, 512
    spec3 = jax.random.normal(k_spec, (B3, F3, T3), dtype=jnp.float32)
    y3 = jax.random.randint(k_y, (B3,), 0, cfg1["num_classes"])
    (s3, y3o), (s3r, y3or) = run(cfg1, spec3, y3, budget=16 * 1024)
    assert bool(jnp.allclose(s3, s3r, atol=1e-5, rtol=1e-5))
    assert bool(jnp.allclose(y3o, y3or, atol=1e-6))

    print("KERNEL_OK")
</pallas_src>

<mosaic_0001>
module attributes {stable_mosaic.version = 11 : i64} {
  func.func @_mix_two_read_kernel(%arg0: i32, %arg1: i32, %arg2: memref<1xf32, #tpu.memory_space<smem>>, %arg3: memref<1x16x128xf32, #tpu.memory_space<vmem>>, %arg4: memref<1x16x128xf32, #tpu.memory_space<vmem>>, %arg5: memref<1x16x128xf32, #tpu.memory_space<vmem>>) attributes {dimension_semantics = [#tpu.dimension_semantics<parallel>, #tpu.dimension_semantics<parallel>], iteration_bounds = array<i64: 2, 1>, scalar_prefetch = 1 : i64, scratch_operands = 0 : i64, tpu.core_type = #tpu.core_type<tc>, window_params = [{transform_indices = @transform_0, window_bounds = array<i64: 1, 16, 128>}, {transform_indices = @transform_1, window_bounds = array<i64: 1, 16, 128>}, {transform_indices = @transform_2, window_bounds = array<i64: 1, 16, 128>}]} {
    %c0 = arith.constant 0 : index
    %c0_0 = arith.constant 0 : index
    %c0_1 = arith.constant 0 : index
    %0 = vector.load %arg3[%c0, %c0_0, %c0_1] : memref<1x16x128xf32, #tpu.memory_space<vmem>>, vector<1x16x128xf32>
    %1 = vector.shape_cast %0 : vector<1x16x128xf32> to vector<16x128xf32>
    %c0_2 = arith.constant 0 : index
    %c0_3 = arith.constant 0 : index
    %c0_4 = arith.constant 0 : index
    %2 = vector.load %arg4[%c0_2, %c0_3, %c0_4] : memref<1x16x128xf32, #tpu.memory_space<vmem>>, vector<1x16x128xf32>
    %3 = vector.shape_cast %2 : vector<1x16x128xf32> to vector<16x128xf32>
    %c0_5 = arith.constant 0 : index
    %4 = memref.load %arg2[%c0_5] : memref<1xf32, #tpu.memory_space<smem>>
    %5 = arith.subf %1, %3 : vector<16x128xf32>
    %6 = vector.broadcast %4 : f32 to vector<16x128xf32>
    %7 = arith.mulf %6, %5 : vector<16x128xf32>
    %8 = arith.addf %3, %7 : vector<16x128xf32>
    %c0_6 = arith.constant 0 : index
    %c0_7 = arith.constant 0 : index
    %c0_8 = arith.constant 0 : index
    %9 = vector.load %arg5[%c0_6, %c0_7, %c0_8] : memref<1x16x128xf32, #tpu.memory_space<vmem>>, vector<1x16x128xf32>
    %10 = vector.shape_cast %9 : vector<1x16x128xf32> to vector<16x128xf32>
    %11 = vector.shape_cast %8 : vector<16x128xf32> to vector<1x16x128xf32>
    tpu.vector_store %arg5[%c0_6, %c0_7, %c0_8], %11 {strides = array<i32>} : memref<1x16x128xf32, #tpu.memory_space<vmem>>, vector<1x16x128xf32>,
    return
  }
  func.func @transform_0(%arg0: i32, %arg1: i32, %arg2: memref<1xf32, #tpu.memory_space<smem>>) -> (i32, i32, i32) {
    %c0_i32 = arith.constant 0 : i32
    %c0_i32_0 = arith.constant 0 : i32
    return %arg0, %c0_i32, %arg1 : i32, i32, i32
  }
  func.func @transform_1(%arg0: i32, %arg1: i32, %arg2: memref<1xf32, #tpu.memory_space<smem>>) -> (i32, i32, i32) {
    %c2_i32 = arith.constant 2 : i32
    %0 = arith.addi %arg0, %c2_i32 : i32
    %c1_i32 = arith.constant 1 : i32
    %1 = arith.subi %0, %c1_i32 : i32
    %c2_i32_0 = arith.constant 2 : i32
    %c0_i32 = arith.constant 0 : i32
    %2 = arith.cmpi eq, %c2_i32_0, %c0_i32 : i32
    %c1_i32_1 = arith.constant 1 : i32
    %3 = arith.select %2, %c1_i32_1, %c2_i32_0 : i32
    %4 = arith.remsi %1, %3 : i32
    %c0_i32_2 = arith.constant 0 : i32
    %5 = arith.cmpi ne, %4, %c0_i32_2 : i32
    %c0_i32_3 = arith.constant 0 : i32
    %6 = arith.cmpi slt, %4, %c0_i32_3 : i32
    %c0_i32_4 = arith.constant 0 : i32
    %7 = arith.cmpi slt, %3, %c0_i32_4 : i32
    %8 = arith.xori %6, %7 : i1
    %9 = arith.andi %8, %5 : i1
    %10 = arith.addi %4, %3 : i32
    %11 = arith.select %9, %10, %4 : i32
    %c0_i32_5 = arith.constant 0 : i32
    %c0_i32_6 = arith.constant 0 : i32
    return %11, %c0_i32_5, %arg1 : i32, i32, i32
  }
  func.func @transform_2(%arg0: i32, %arg1: i32, %arg2: memref<1xf32, #tpu.memory_space<smem>>) -> (i32, i32, i32) {
    %c0_i32 = arith.constant 0 : i32
    %c0_i32_0 = arith.constant 0 : i32
    return %arg0, %c0_i32, %arg1 : i32, i32, i32
  }
}

module attributes {stable_mosaic.version = 11 : i64} {
  func.func @_mix_two_read_kernel(%arg0: i32, %arg1: i32, %arg2: memref<1xf32, #tpu.memory_space<smem>>, %arg3: memref<4xi32, #tpu.memory_space<smem>>, %arg4: memref<4xi32, #tpu.memory_space<smem>>, %arg5: memref<4xi32, #tpu.memory_space<smem>>, %arg6: memref<4xi32, #tpu.memory_space<smem>>, %arg7: memref<1x16x128xf32, #tpu.memory_space<vmem>>, %arg8: memref<1x16x128xf32, #tpu.memory_space<vmem>>, %arg9: memref<1x16x128xf32, #tpu.memory_space<vmem>>) attributes {dimension_semantics = [#tpu.dimension_semantics<parallel>, #tpu.dimension_semantics<parallel>], iteration_bounds = array<i64: 2, 1>, scalar_prefetch = 5 : i64, scratch_operands = 0 : i64, tpu.core_type = #tpu.core_type<tc>, window_params = [{transform_indices = @transform_0, window_bounds = array<i64: 1, 16, 128>}, {transform_indices = @transform_1, window_bounds = array<i64: 1, 16, 128>}, {transform_indices = @transform_2, window_bounds = array<i64: 1, 16, 128>}]} {
    %c0 = arith.constant 0 : index
    %c0_0 = arith.constant 0 : index
    %c0_1 = arith.constant 0 : index
    %0 = vector.load %arg7[%c0, %c0_0, %c0_1] : memref<1x16x128xf32, #tpu.memory_space<vmem>>, vector<1x16x128xf32>
    %1 = vector.shape_cast %0 : vector<1x16x128xf32> to vector<16x128xf32>
    %c0_2 = arith.constant 0 : index
    %c0_3 = arith.constant 0 : index
    %c0_4 = arith.constant 0 : index
    %2 = vector.load %arg8[%c0_2, %c0_3, %c0_4] : memref<1x16x128xf32, #tpu.memory_space<vmem>>, vector<1x16x128xf32>
    %3 = vector.shape_cast %2 : vector<1x16x128xf32> to vector<16x128xf32>
    %c0_5 = arith.constant 0 : index
    %4 = memref.load %arg2[%c0_5] : memref<1xf32, #tpu.memory_space<smem>>
    %5 = arith.subf %1, %3 : vector<16x128xf32>
    %6 = vector.broadcast %4 : f32 to vector<16x128xf32>
    %7 = arith.mulf %6, %5 : vector<16x128xf32>
    %8 = arith.addf %3, %7 : vector<16x128xf32>
    %9 = tpu.iota {dimensions = array<i32: 1>} : vector<1x128xi32>
    %c128_i32 = arith.constant 128 : i32
    %10 = arith.muli %arg1, %c128_i32 : i32
    %11 = vector.broadcast %10 : i32 to vector<1x128xi32>
    %12 = arith.addi %9, %11 : vector<1x128xi32>
    %13 = tpu.iota {dimensions = array<i32: 0>} : vector<16x1xi32>
    %false = arith.constant false
    %14 = vector.broadcast %false : i1 to vector<1x128xi1>
    %c2_i32 = arith.constant 2 : i32
    %15 = arith.muli %arg0, %c2_i32 : i32
    %c0_i32 = arith.constant 0 : i32
    %16 = arith.addi %15, %c0_i32 : i32
    %17 = arith.index_cast %16 : i32 to index
    %18 = memref.load %arg3[%17] : memref<4xi32, #tpu.memory_space<smem>>
    %c2_i32_6 = arith.constant 2 : i32
    %19 = arith.muli %arg0, %c2_i32_6 : i32
    %c0_i32_7 = arith.constant 0 : i32
    %20 = arith.addi %19, %c0_i32_7 : i32
    %21 = arith.index_cast %20 : i32 to index
    %22 = memref.load %arg4[%21] : memref<4xi32, #tpu.memory_space<smem>>
    %23 = vector.broadcast %18 : i32 to vector<1x128xi32>
    %24 = arith.cmpi sge, %12, %23 : vector<1x128xi32>
    %25 = arith.addi %18, %22 : i32
    %26 = vector.broadcast %25 : i32 to vector<1x128xi32>
    %27 = arith.cmpi slt, %12, %26 : vector<1x128xi32>
    %28 = arith.andi %24, %27 : vector<1x128xi1>
    %29 = arith.ori %14, %28 : vector<1x128xi1>
    %c2_i32_8 = arith.constant 2 : i32
    %30 = arith.muli %arg0, %c2_i32_8 : i32
    %c1_i32 = arith.constant 1 : i32
    %31 = arith.addi %30, %c1_i32 : i32
    %32 = arith.index_cast %31 : i32 to index
    %33 = memref.load %arg3[%32] : memref<4xi32, #tpu.memory_space<smem>>
    %c2_i32_9 = arith.constant 2 : i32
    %34 = arith.muli %arg0, %c2_i32_9 : i32
    %c1_i32_10 = arith.constant 1 : i32
    %35 = arith.addi %34, %c1_i32_10 : i32
    %36 = arith.index_cast %35 : i32 to index
    %37 = memref.load %arg4[%36] : memref<4xi32, #tpu.memory_space<smem>>
    %38 = vector.broadcast %33 : i32 to vector<1x128xi32>
    %39 = arith.cmpi sge, %12, %38 : vector<1x128xi32>
    %40 = arith.addi %33, %37 : i32
    %41 = vector.broadcast %40 : i32 to vector<1x128xi32>
    %42 = arith.cmpi slt, %12, %41 : vector<1x128xi32>
    %43 = arith.andi %39, %42 : vector<1x128xi1>
    %44 = arith.ori %29, %43 : vector<1x128xi1>
    %false_11 = arith.constant false
    %45 = vector.broadcast %false_11 : i1 to vector<16x1xi1>
    %c2_i32_12 = arith.constant 2 : i32
    %46 = arith.muli %arg0, %c2_i32_12 : i32
    %c0_i32_13 = arith.constant 0 : i32
    %47 = arith.addi %46, %c0_i32_13 : i32
    %48 = arith.index_cast %47 : i32 to index
    %49 = memref.load %arg5[%48] : memref<4xi32, #tpu.memory_space<smem>>
    %c2_i32_14 = arith.constant 2 : i32
    %50 = arith.muli %arg0, %c2_i32_14 : i32
    %c0_i32_15 = arith.constant 0 : i32
    %51 = arith.addi %50, %c0_i32_15 : i32
    %52 = arith.index_cast %51 : i32 to index
    %53 = memref.load %arg6[%52] : memref<4xi32, #tpu.memory_space<smem>>
    %54 = vector.broadcast %49 : i32 to vector<16x1xi32>
    %55 = arith.cmpi sge, %13, %54 : vector<16x1xi32>
    %56 = arith.addi %49, %53 : i32
    %57 = vector.broadcast %56 : i32 to vector<16x1xi32>
    %58 = arith.cmpi slt, %13, %57 : vector<16x1xi32>
    %59 = arith.andi %55, %58 : vector<16x1xi1>
    %60 = arith.ori %45, %59 : vector<16x1xi1>
    %c2_i32_16 = arith.constant 2 : i32
    %61 = arith.muli %arg0, %c2_i32_16 : i32
    %c1_i32_17 = arith.constant 1 : i32
    %62 = arith.addi %61, %c1_i32_17 : i32
    %63 = arith.index_cast %62 : i32 to index
    %64 = memref.load %arg5[%63] : memref<4xi32, #tpu.memory_space<smem>>
    %c2_i32_18 = arith.constant 2 : i32
    %65 = arith.muli %arg0, %c2_i32_18 : i32
    %c1_i32_19 = arith.constant 1 : i32
    %66 = arith.addi %65, %c1_i32_19 : i32
    %67 = arith.index_cast %66 : i32 to index
    %68 = memref.load %arg6[%67] : memref<4xi32, #tpu.memory_space<smem>>
    %69 = vector.broadcast %64 : i32 to vector<16x1xi32>
    %70 = arith.cmpi sge, %13, %69 : vector<16x1xi32>
    %71 = arith.addi %64, %68 : i32
    %72 = vector.broadcast %71 : i32 to vector<16x1xi32>
    %73 = arith.cmpi slt, %13, %72 : vector<16x1xi32>
    %74 = arith.andi %70, %73 : vector<16x1xi1>
    %75 = arith.ori %60, %74 : vector<16x1xi1>
    %76 = vector.broadcast %44 : vector<1x128xi1> to vector<16x128xi1>
    %77 = vector.broadcast %75 : vector<16x1xi1> to vector<16x128xi1>
    %78 = arith.ori %76, %77 : vector<16x128xi1>
    %cst = arith.constant 0.000000e+00 : f32
    %79 = vector.broadcast %cst : f32 to vector<16x128xf32>
    %80 = arith.select %78, %79, %8 : vector<16x128xi1>, vector<16x128xf32>
    %c0_20 = arith.constant 0 : index
    %c0_21 = arith.constant 0 : index
    %c0_22 = arith.constant 0 : index
    %81 = vector.load %arg9[%c0_20, %c0_21, %c0_22] : memref<1x16x128xf32, #tpu.memory_space<vmem>>, vector<1x16x128xf32>
    %82 = vector.shape_cast %81 : vector<1x16x128xf32> to vector<16x128xf32>
    %83 = vector.shape_cast %80 : vector<16x128xf32> to vector<1x16x128xf32>
    tpu.vector_store %arg9[%c0_20, %c0_21, %c0_22], %83 {strides = array<i32>} : memref<1x16x128xf32, #tpu.memory_space<vmem>>, vector<1x16x128xf32>,
    return
  }
  func.func @transform_0(%arg0: i32, %arg1: i32, %arg2: memref<1xf32, #tpu.memory_space<smem>>, %arg3: memref<4xi32, #tpu.memory_space<smem>>, %arg4: memref<4xi32, #tpu.memory_space<smem>>, %arg5: memref<4xi32, #tpu.memory_space<smem>>, %arg6: memref<4xi32, #tpu.memory_space<smem>>) -> (i32, i32, i32) {
    %c0_i32 = arith.constant 0 : i32
    %c0_i32_0 = arith.constant 0 : i32
    return %arg0, %c0_i32, %arg1 : i32, i32, i32
  }
  func.func @transform_1(%arg0: i32, %arg1: i32, %arg2: memref<1xf32, #tpu.memory_space<smem>>, %arg3: memref<4xi32, #tpu.memory_space<smem>>, %arg4: memref<4xi32, #tpu.memory_space<smem>>, %arg5: memref<4xi32, #tpu.memory_space<smem>>, %arg6: memref<4xi32, #tpu.memory_space<smem>>) -> (i32, i32, i32) {
    %c2_i32 = arith.constant 2 : i32
    %0 = arith.addi %arg0, %c2_i32 : i32
    %c1_i32 = arith.constant 1 : i32
    %1 = arith.subi %0, %c1_i32 : i32
    %c2_i32_0 = arith.constant 2 : i32
    %c0_i32 = arith.constant 0 : i32
    %2 = arith.cmpi eq, %c2_i32_0, %c0_i32 : i32
    %c1_i32_1 = arith.constant 1 : i32
    %3 = arith.select %2, %c1_i32_1, %c2_i32_0 : i32
    %4 = arith.remsi %1, %3 : i32
    %c0_i32_2 = arith.constant 0 : i32
    %5 = arith.cmpi ne, %4, %c0_i32_2 : i32
    %c0_i32_3 = arith.constant 0 : i32
    %6 = arith.cmpi slt, %4, %c0_i32_3 : i32
    %c0_i32_4 = arith.constant 0 : i32
    %7 = arith.cmpi slt, %3, %c0_i32_4 : i32
    %8 = arith.xori %6, %7 : i1
    %9 = arith.andi %8, %5 : i1
    %10 = arith.addi %4, %3 : i32
    %11 = arith.select %9, %10, %4 : i32
    %c0_i32_5 = arith.constant 0 : i32
    %c0_i32_6 = arith.constant 0 : i32
    return %11, %c0_i32_5, %arg1 : i32, i32, i32
  }
  func.func @transform_2(%arg0: i32, %arg1: i32, %arg2: memref<1xf32, #tpu.memory_space<smem>>, %arg3: memref<4xi32, #tpu.memory_space<smem>>, %arg4: memref<4xi32, #tpu.memory_space<smem>>, %arg5: memref<4xi32, #tpu.memory_space<smem>>, %arg6: memref<4xi32, #tpu.memory_space<smem>>) -> (i32, i32, i32) {
    %c0_i32 = arith.constant 0 : i32
    %c0_i32_0 = arith.constant 0 : i32
    return %arg0, %c0_i32, %arg1 : i32, i32, i32
  }
}

module attributes {stable_mosaic.version = 11 : i64} {
  func.func @_mask_only_kernel(%arg0: i32, %arg1: i32, %arg2: memref<4xi32, #tpu.memory_space<smem>>, %arg3: memref<4xi32, #tpu.memory_space<smem>>, %arg4: memref<4xi32, #tpu.memory_space<smem>>, %arg5: memref<4xi32, #tpu.memory_space<smem>>, %arg6: memref<1x16x128xf32, #tpu.memory_space<vmem>>, %arg7: memref<1x16x128xf32, #tpu.memory_space<vmem>>) attributes {dimension_semantics = [#tpu.dimension_semantics<parallel>, #tpu.dimension_semantics<parallel>], iteration_bounds = array<i64: 2, 1>, scalar_prefetch = 4 : i64, scratch_operands = 0 : i64, tpu.core_type = #tpu.core_type<tc>, window_params = [{transform_indices = @transform_0, window_bounds = array<i64: 1, 16, 128>}, {transform_indices = @transform_1, window_bounds = array<i64: 1, 16, 128>}]} {
    %c1_i32 = arith.constant 1 : i32
    %0 = arith.muli %arg0, %c1_i32 : i32
    %1 = tpu.iota {dimensions = array<i32: 1>} : vector<1x128xi32>
    %c128_i32 = arith.constant 128 : i32
    %2 = arith.muli %arg1, %c128_i32 : i32
    %3 = vector.broadcast %2 : i32 to vector<1x128xi32>
    %4 = arith.addi %1, %3 : vector<1x128xi32>
    %5 = tpu.iota {dimensions = array<i32: 0>} : vector<16x1xi32>
    %c0 = arith.constant 0 : index
    %c0_0 = arith.constant 0 : index
    %c0_1 = arith.constant 0 : index
    %6 = vector.load %arg6[%c0, %c0_0, %c0_1] : memref<1x16x128xf32, #tpu.memory_space<vmem>>, vector<1x16x128xf32>
    %7 = vector.shape_cast %6 : vector<1x16x128xf32> to vector<16x128xf32>
    %c0_i32 = arith.constant 0 : i32
    %8 = arith.addi %0, %c0_i32 : i32
    %false = arith.constant false
    %9 = vector.broadcast %false : i1 to vector<1x128xi1>
    %c2_i32 = arith.constant 2 : i32
    %10 = arith.muli %8, %c2_i32 : i32
    %c0_i32_2 = arith.constant 0 : i32
    %11 = arith.addi %10, %c0_i32_2 : i32
    %12 = arith.index_cast %11 : i32 to index
    %13 = memref.load %arg2[%12] : memref<4xi32, #tpu.memory_space<smem>>
    %c2_i32_3 = arith.constant 2 : i32
    %14 = arith.muli %8, %c2_i32_3 : i32
    %c0_i32_4 = arith.constant 0 : i32
    %15 = arith.addi %14, %c0_i32_4 : i32
    %16 = arith.index_cast %15 : i32 to index
    %17 = memref.load %arg3[%16] : memref<4xi32, #tpu.memory_space<smem>>
    %18 = vector.broadcast %13 : i32 to vector<1x128xi32>
    %19 = arith.cmpi sge, %4, %18 : vector<1x128xi32>
    %20 = arith.addi %13, %17 : i32
    %21 = vector.broadcast %20 : i32 to vector<1x128xi32>
    %22 = arith.cmpi slt, %4, %21 : vector<1x128xi32>
    %23 = arith.andi %19, %22 : vector<1x128xi1>
    %24 = arith.ori %9, %23 : vector<1x128xi1>
    %c2_i32_5 = arith.constant 2 : i32
    %25 = arith.muli %8, %c2_i32_5 : i32
    %c1_i32_6 = arith.constant 1 : i32
    %26 = arith.addi %25, %c1_i32_6 : i32
    %27 = arith.index_cast %26 : i32 to index
    %28 = memref.load %arg2[%27] : memref<4xi32, #tpu.memory_space<smem>>
    %c2_i32_7 = arith.constant 2 : i32
    %29 = arith.muli %8, %c2_i32_7 : i32
    %c1_i32_8 = arith.constant 1 : i32
    %30 = arith.addi %29, %c1_i32_8 : i32
    %31 = arith.index_cast %30 : i32 to index
    %32 = memref.load %arg3[%31] : memref<4xi32, #tpu.memory_space<smem>>
    %33 = vector.broadcast %28 : i32 to vector<1x128xi32>
    %34 = arith.cmpi sge, %4, %33 : vector<1x128xi32>
    %35 = arith.addi %28, %32 : i32
    %36 = vector.broadcast %35 : i32 to vector<1x128xi32>
    %37 = arith.cmpi slt, %4, %36 : vector<1x128xi32>
    %38 = arith.andi %34, %37 : vector<1x128xi1>
    %39 = arith.ori %24, %38 : vector<1x128xi1>
    %false_9 = arith.constant false
    %40 = vector.broadcast %false_9 : i1 to vector<16x1xi1>
    %c2_i32_10 = arith.constant 2 : i32
    %41 = arith.muli %8, %c2_i32_10 : i32
    %c0_i32_11 = arith.constant 0 : i32
    %42 = arith.addi %41, %c0_i32_11 : i32
    %43 = arith.index_cast %42 : i32 to index
    %44 = memref.load %arg4[%43] : memref<4xi32, #tpu.memory_space<smem>>
    %c2_i32_12 = arith.constant 2 : i32
    %45 = arith.muli %8, %c2_i32_12 : i32
    %c0_i32_13 = arith.constant 0 : i32
    %46 = arith.addi %45, %c0_i32_13 : i32
    %47 = arith.index_cast %46 : i32 to index
    %48 = memref.load %arg5[%47] : memref<4xi32, #tpu.memory_space<smem>>
    %49 = vector.broadcast %44 : i32 to vector<16x1xi32>
    %50 = arith.cmpi sge, %5, %49 : vector<16x1xi32>
    %51 = arith.addi %44, %48 : i32
    %52 = vector.broadcast %51 : i32 to vector<16x1xi32>
    %53 = arith.cmpi slt, %5, %52 : vector<16x1xi32>
    %54 = arith.andi %50, %53 : vector<16x1xi1>
    %55 = arith.ori %40, %54 : vector<16x1xi1>
    %c2_i32_14 = arith.constant 2 : i32
    %56 = arith.muli %8, %c2_i32_14 : i32
    %c1_i32_15 = arith.constant 1 : i32
    %57 = arith.addi %56, %c1_i32_15 : i32
    %58 = arith.index_cast %57 : i32 to index
    %59 = memref.load %arg4[%58] : memref<4xi32, #tpu.memory_space<smem>>
    %c2_i32_16 = arith.constant 2 : i32
    %60 = arith.muli %8, %c2_i32_16 : i32
    %c1_i32_17 = arith.constant 1 : i32
    %61 = arith.addi %60, %c1_i32_17 : i32
    %62 = arith.index_cast %61 : i32 to index
    %63 = memref.load %arg5[%62] : memref<4xi32, #tpu.memory_space<smem>>
    %64 = vector.broadcast %59 : i32 to vector<16x1xi32>
    %65 = arith.cmpi sge, %5, %64 : vector<16x1xi32>
    %66 = arith.addi %59, %63 : i32
    %67 = vector.broadcast %66 : i32 to vector<16x1xi32>
    %68 = arith.cmpi slt, %5, %67 : vector<16x1xi32>
    %69 = arith.andi %65, %68 : vector<16x1xi1>
    %70 = arith.ori %55, %69 : vector<16x1xi1>
    %71 = vector.broadcast %39 : vector<1x128xi1> to vector<16x128xi1>
    %72 = vector.broadcast %70 : vector<16x1xi1> to vector<16x128xi1>
    %73 = arith.ori %71, %72 : vector<16x128xi1>
    %cst = arith.constant 0.000000e+00 : f32
    %74 = vector.broadcast %cst : f32 to vector<16x128xf32>
    %75 = arith.select %73, %74, %7 : vector<16x128xi1>, vector<16x128xf32>
    %c0_18 = arith.constant 0 : index
    %c0_19 = arith.constant 0 : index
    %c0_20 = arith.constant 0 : index
    %76 = vector.load %arg7[%c0_18, %c0_19, %c0_20] : memref<1x16x128xf32, #tpu.memory_space<vmem>>, vector<1x16x128xf32>
    %77 = vector.shape_cast %76 : vector<1x16x128xf32> to vector<16x128xf32>
    %78 = vector.shape_cast %75 : vector<16x128xf32> to vector<1x16x128xf32>
    tpu.vector_store %arg7[%c0_18, %c0_19, %c0_20], %78 {strides = array<i32>} : memref<1x16x128xf32, #tpu.memory_space<vmem>>, vector<1x16x128xf32>,
    return
  }
  func.func @transform_0(%arg0: i32, %arg1: i32, %arg2: memref<4xi32, #tpu.memory_space<smem>>, %arg3: memref<4xi32, #tpu.memory_space<smem>>, %arg4: memref<4xi32, #tpu.memory_space<smem>>, %arg5: memref<4xi32, #tpu.memory_space<smem>>) -> (i32, i32, i32) {
    %c0_i32 = arith.constant 0 : i32
    %c0_i32_0 = arith.constant 0 : i32
    return %arg0, %c0_i32, %arg1 : i32, i32, i32
  }
  func.func @transform_1(%arg0: i32, %arg1: i32, %arg2: memref<4xi32, #tpu.memory_space<smem>>, %arg3: memref<4xi32, #tpu.memory_space<smem>>, %arg4: memref<4xi32, #tpu.memory_space<smem>>, %arg5: memref<4xi32, #tpu.memory_space<smem>>) -> (i32, i32, i32) {
    %c0_i32 = arith.constant 0 : i32
    %c0_i32_0 = arith.constant 0 : i32
    return %arg0, %c0_i32, %arg1 : i32, i32, i32
  }
}

</mosaic_0001>

<bundles_post_ra>
// kernel: branch_2_fun.1
= control target key start
LH: loop header
LB: loop body
LE: loop exit
PB: predicated region body
PF: predicated region fallthrough
CT: control target
= control target key end

     0   :  { %s726_s0 = inlined_call_operand.<no memory space> [shape: f32[1], index: 0, kind: input, shape index: {}]   ;;  %s727_s1 = inlined_call_operand.vmem [shape: f32[2,16,128], index: 1, kind: input, shape index: {}, may-alias: {1,2}]   ;;  %s728_s2 = inlined_call_operand.vmem [shape: f32[2,16,128], index: 2, kind: input, shape index: {}, may-alias: {1,2}]   ;;  %s729_s3 = inlined_call_operand.hbm [shape: f32[2,16,128], index: 3, kind: output, shape index: {}]  }
   0x1   :  { %8 = sst [smem:[#allocation3]] %s726_s0 }
   0x2   :  { %9 = vsyncpa [#allocation5], 0 }
   0x3   :  { %11 = vsyncpa [#allocation5 + $0x1], 0  ;;  %s604_s14 = smov 0   ;;  %s606_s15 = smov 0  }
   0x4   :  { %s608_s16 = smov 0   ;;  %s610_s17 = smov 0  }
   0x5   :  { %s612_s18 = smov 0   ;;  %s614_s19 = smov 0  }
   0x6 LB: > { %s416_s0 = sadd.s32 4294967295, %s576_s19   ;;  %s417_s20 = sadd.s32 4294967294, %s576_s19   ;;  %s576_s19 = sphi %s614_s19, %s17_s19   ;;  %s572_s18 = sphi %s612_s18, %s736_s18   ;;  %s568_s17 = sphi %s610_s17, %s735_s17   ;;  %s564_s16 = sphi %s608_s16, %s734_s16   ;;  %s560_s15 = sphi %s606_s15, %s733_s15   ;;  %s556_s14 = sphi %s604_s14, %s732_s14  }
   0x7   : > { %s29_s21 = sadd.s32 1, %s572_s18  ;;  %s120_s22 = sadd.s32 1, %s564_s16 }
   0x8   : > { %p31_p0 = scmp.ge.s32.totalorder %s29_s21, 2  ;;  %p130_p1 = scmp.ne.s32.totalorder %s564_s16, %s560_s15 }
   0x9   : > { %p131_p2 = scmp.eq.s32.totalorder %s416_s0, 1  ;;  %p136_p3 = scmp.ne.s32.totalorder %s560_s15, %s556_s14 }
   0xa   : > { %s738_s21 = smov (%p31_p0, %s29_s21), 0  ;;  %p137_p5 = scmp.eq.s32.totalorder %s417_s20, 1 }
   0xb   : > { %p644_p4 = por %p131_p2, %p130_p1  ;;  %s115_s24 = ssub.s32 %s572_s18, %s738_s21 }
   0xc   : > { %p426_p6 = scmp.ge.s32.totalorder %s576_s19, 1  ;;  %p118_p7 = scmp.eq.s32.totalorder %s115_s24, 0 }
   0xd   : > { %p651_p8 = por %p137_p5, %p136_p3  ;;  %p203_p9 = scmp.lt.s32.totalorder %s576_s19, 3 }
   0xe   : > { %s657_s26 = scalar_select %p118_p7, %s564_s16, %s120_s22  }
   0xf   : > { %p204_p10 = pnand %p426_p6, %p203_p9 }
  0x10   : > { %p249_p11 = scmp.lt.s32.totalorder (!%p204_p10), %s568_s17, 1  ;;  %s257_s27 = sadd.s32 (!%p204_p10), 1, %s568_s17 }
  0x11   : > { %207 = sbr.rel (%p204_p10) target bundleno = 53 (0x35), region = 28  ;;  %p258_p12 = scmp.lt.s32.totalorder (!%p204_p10), %s257_s27, 0 }
  0x12   : > { %s259_s29 = ssub.s32 (!%p204_p10), 0, %s257_s27  ;;  %s246_s6 = sand.u32 (!%p204_p10), 1, %s560_s15  }
  0x13   : > { %s430_s30 = smin.u32 (!%p204_p10), %s259_s29, %s257_s27  ;;  %s295_s9 = sld [smem:[#allocation3]] (!%p204_p10) }
  0x14   : > { %s261_s4 = sand.u32 (!%p204_p10), 1, %s430_s30   ;;  %s427_s10 = sshll.u32 (!%p204_p10), %s246_s6, 4 }
  0x15   : > { %s262_s5 = ssub.s32 (!%p204_p10), 0, %s261_s4  ;;  %s248_s27 = scalar_lea.vmem (!%p204_p10), [#allocation4], %s427_s10 }
  0x16   : > { %s250_s28 = scalar_select %p249_p11, %s568_s17, 1 }
  0x17   : > { %s740_s5 = smov (!%p258_p12, %s262_s5), %s261_s4  ;;  %s442_s29 = sshll.u32 %s568_s17, 8 }
  0x18   : > { %p432_p13 = scmp.lt.s32.totalorder %s740_s5, 0  ;;  %s268_s7 = sadd.s32 2, %s740_s5 }
  0x19   : > { %s440_s8 = sshll.u32 %s250_s28, 4  ;;  %v298_v3 = vstv %s295_s9  ;;  %s320_s28 = sshll.u32 %s248_s27, 4  ;;  %s672_s28 = int_to_ptr.vmem [resolvable:$true] %s320_s28 }
  0x1a   : > { %s742_s7 = smov (!%p432_p13, %s268_s7), %s740_s5  ;;  %s256_s13 = scalar_lea.vmem %s727_s1, %s440_s8 }
  0x1b   : > { %p270_p0 = scmp.lt.s32.totalorder %s742_s7, 1  ;;  %v291_v0 = vld [vmem:[%s256_s13] sm:$0xff]  ;;  %v292_v1 = vld [vmem:[%s256_s13 + $0x8] sm:$0xff]  ;;  %s677_s5 = scalar_lea.hbm %s729_s3, %s442_s29 }
  0x1c   : > { %s500_s17 = scalar_lea.vmem %s672_s28, 256  ;;  %s578_s8 = smov [#allocation4]  }
  0x1d   : > { %s744_s7 = smov (!%p270_p0, %s742_s7), 1  ;;  %p501_p1 = scmp.ne.s32.totalorder %s672_s28, %s500_s17 }
  0x1e   : > { %s441_s0 = sshll.u32 %s744_s7, 4  ;;  %s681_s7 = scalar_lea.sflag [#allocation5], %s246_s6 }
  0x1f   : > { %s277_s24 = scalar_lea.vmem %s728_s2, %s441_s0  ;;  %p502_p2 = pnand %p501_p1, %p644_p4 }
  0x20   : > { %v293_v2 = vld [vmem:[%s277_s24] sm:$0xff]  ;;  %v294_v4 = vld [vmem:[%s277_s24 + $0x8] sm:$0xff]  ;;  %s504_s9 = sshll.u32 %s578_s8, 4  ;;  %s505_s9 = int_to_ptr.vmem [resolvable:$false] %s504_s9 }
  0x21   : > { %v296_v5 = vsub.f32 %v291_v0, %v293_v2  ;;  %v297_v6 = vsub.f32 %v292_v1, %v294_v4  ;;  %p503_p3 = pneg %p502_p2  ;;  %s506_s10 = scalar_lea.vmem %s505_s9, 512 }
  0x22   : > { %p507_p5 = scmp.lt.s32.totalorder %s672_s28, %s505_s9  ;;  %p508_p6 = scmp.lt.s32.totalorder %s506_s10, %s500_s17 }
  0x23   : > { %v299_v7 = vmul.f32 %v298_v3, %v296_v5  ;;  %v300_v8 = vmul.f32 %v298_v3, %v297_v6 }
  0x24   : > { %p509_p7 = por %p508_p6, %p507_p5 }
  0x25   : > { %v301_v9 = vadd.f32 %v299_v7, %v293_v2  ;;  %v302_v10 = vadd.f32 %v300_v8, %v294_v4 }
  0x26   : > { %p510_p9 = pnand %p509_p7, %p503_p3 }
  0x27   : > { %303 = vst [vmem:[%s248_s27] sm:$0xff] %v301_v9  ;;  %304 = vst [vmem:[%s248_s27 + $0x8] sm:$0xff] %v302_v10 }
  0x28   : > { %513 = shalt.err (!%p510_p9)
}
  0x29   : > { %s514_s6 = scalar_lea.hbm %s677_s5, 256  ;;  %s518_s13 = scalar_lea.hbm %s729_s3, 512 }
  0x2a   : > { %p515_p10 = scmp.ne.s32.totalorder %s677_s5, %s514_s6  ;;  %p519_p13 = scmp.lt.s32.totalorder %s677_s5, %s729_s3 }
  0x2b   : > { %p520_p0 = scmp.lt.s32.totalorder %s518_s13, %s514_s6 }
  0x2c   : > { %p516_p11 = pnand %p515_p10, %p644_p4 }
  0x2d   : > { %p521_p1 = por %p520_p0, %p519_p13 }
  0x2e   : > { %p517_p12 = pneg %p516_p11 }
  0x30   : > { %p522_p2 = pnand %p521_p1, %p517_p12 }
  0x32   : > { %525 = shalt.err (!%p522_p2)
}
  0x33   : > { %s579_s22 = smov 128   ;;  %s580_s24 = smov 8  }
  0x34   : > { %443 = dma.vmem_to_hbm [thread:$0]  (%p644_p4), %s672_s28, 256, %s677_s5, %s681_s7, %s579_s22, %s579_s22, %s580_s24  }
  0x35 PF: > { %p449_p3 = scmp.ge.s32.totalorder %s576_s19, 2  ;;  %s335_s27 = sand.u32 1, %s556_s14  }
  0x36   : > { %s336_s29 = scalar_lea.sflag [#allocation5], %s335_s27 }
  0x37   : > { %p446_p5 = pnand %p449_p3, %p651_p8 }
  0x39   : > { %p447_p6 = pneg %p446_p5 }
  0x3b   : > { %551 = dma.done.wait (%p447_p6), %s336_s29, 256  }
  0x3c   : > { %553 = vsyncadd (%p447_p6), %s336_s29, 4294967040  ;;  %s17_s19 = sadd.s32 1, %s576_s19   ;;  %s732_s14 = smov %s560_s15 }
  0x3d   : > { %p14_p7 = scmp.ge.s32.totalorder %s17_s19, 4   ;;  %s733_s15 = smov %s564_s16 }
  0x3e   : > { %s734_s16 = smov %s657_s26  ;;  %s735_s17 = smov %s572_s18 }
  0x3f   : > { %s736_s18 = smov %s738_s21  ;;  %16 = sbr.rel (!%p14_p7) target bundleno = 6 (0x6), region = 66 }
  0x44   :  { %341 = vsyncpa [#allocation5], 1 }
  0x45   :  { %343 = vsyncpa [#allocation5 + $0x1], 1 }

// kernel: branch_3_fun.1
= control target key start
LH: loop header
LB: loop body
LE: loop exit
PB: predicated region body
PF: predicated region fallthrough
CT: control target
= control target key end

     0   :  { %s959_s0 = inlined_call_operand.<no memory space> [shape: f32[1], index: 0, kind: input, shape index: {}]   ;;  %s960_s1 = inlined_call_operand.vmem [shape: s32[4], index: 1, kind: input, shape index: {}]   ;;  %s961_s5 = inlined_call_operand.vmem [shape: f32[2,16,128], index: 5, kind: input, shape index: {}, may-alias: {5,6}]   ;;  %s962_s6 = inlined_call_operand.vmem [shape: f32[2,16,128], index: 6, kind: input, shape index: {}, may-alias: {5,6}]   ;;  %s963_s7 = inlined_call_operand.hbm [shape: f32[2,16,128], index: 7, kind: output, shape index: {}]   ;;  %s964_s2 = inlined_call_operand.vmem [shape: s32[4], index: 2, kind: input, shape index: {}]   ;;  %s965_s3 = inlined_call_operand.vmem [shape: s32[4], index: 3, kind: input, shape index: {}]   ;;  %s966_s4 = inlined_call_operand.vmem [shape: s32[4], index: 4, kind: input, shape index: {}]  }
   0x1   :  { %12 = sst [smem:[#allocation3]] %s959_s0  ;;  %s13_s28 = sshll.u32 %s960_s1, 4  ;;  %s14_s28 = int_to_ptr.vmem [resolvable:$true] %s13_s28 }
   0x2   :  { %s17_s8 = sshll.u32 %s964_s2, 4  ;;  %s588_s9 = scalar_lea.vmem %s14_s28, 16  ;;  %s18_s8 = int_to_ptr.vmem [resolvable:$true] %s17_s8 }
   0x3   :  { %p589_p0 = scmp.ne.s32.totalorder %s14_s28, %s588_s9  ;;  %p593_p1 = scmp.lt.s32.totalorder %s14_s28, %s14_s28 }
   0x4   :  { %p594_p2 = scmp.lt.s32.totalorder %s588_s9, %s588_s9 }
   0x6   :  { %p595_p3 = por %p594_p2, %p593_p1 }
   0x8   :  { %p596_p4 = pnand %p595_p3, %p589_p0 }
   0xa   :  { %599 = shalt.err (!%p596_p4)  }
   0xb   :  { %s716_s10 = smov [#allocation4]   ;;  %s21_s12 = sshll.u32 %s965_s3, 4  ;;  %s22_s12 = int_to_ptr.vmem [resolvable:$true] %s21_s12 }
   0xc   :  { %16 = dma.vmem_to_smem %s14_s28, 16, %s716_s10, [#allocation2] }
   0xd   :  { %s600_s1 = scalar_lea.vmem %s18_s8, 16  ;;  %p605_p6 = scmp.lt.s32.totalorder %s18_s8, %s18_s8 }
   0xe   :  { %p601_p5 = scmp.ne.s32.totalorder %s18_s8, %s600_s1  ;;  %p606_p7 = scmp.lt.s32.totalorder %s600_s1, %s600_s1 }
  0x10   :  { %p607_p8 = por %p606_p7, %p605_p6 }
  0x12   :  { %p608_p9 = pnand %p607_p8, %p601_p5 }
  0x14   :  { %611 = shalt.err (!%p608_p9)  }
  0x15   :  { %s717_s2 = smov [#allocation5]   ;;  %s612_s13 = scalar_lea.vmem %s22_s12, 16 }
  0x16   :  { %20 = dma.vmem_to_smem %s18_s8, 16, %s717_s2, [#allocation2] }
  0x17   :  { %p613_p10 = scmp.ne.s32.totalorder %s22_s12, %s612_s13  ;;  %p617_p11 = scmp.lt.s32.totalorder %s22_s12, %s22_s12 }
  0x18   :  { %p618_p12 = scmp.lt.s32.totalorder %s612_s13, %s612_s13 }
  0x1a   :  { %p619_p13 = por %p618_p12, %p617_p11 }
  0x1c   :  { %p620_p0 = pnand %p619_p13, %p613_p10 }
  0x1e   :  { %623 = shalt.err (!%p620_p0)  }
  0x1f   :  { %s718_s14 = smov [#allocation6]   ;;  %s25_s16 = sshll.u32 %s966_s4, 4  ;;  %s26_s16 = int_to_ptr.vmem [resolvable:$true] %s25_s16 }
  0x20   :  { %24 = dma.vmem_to_smem %s22_s12, 16, %s718_s14, [#allocation2] }
  0x21   :  { %s624_s17 = scalar_lea.vmem %s26_s16, 16  ;;  %p629_p2 = scmp.lt.s32.totalorder %s26_s16, %s26_s16 }
  0x22   :  { %p625_p1 = scmp.ne.s32.totalorder %s26_s16, %s624_s17  ;;  %p630_p3 = scmp.lt.s32.totalorder %s624_s17, %s624_s17 }
  0x24   :  { %p631_p4 = por %p630_p3, %p629_p2 }
  0x26   :  { %p632_p5 = pnand %p631_p4, %p625_p1 }
  0x28   :  { %635 = shalt.err (!%p632_p5)  }
  0x29   :  { %s719_s18 = smov [#allocation7]  }
  0x2a   :  { %28 = dma.vmem_to_smem %s26_s16, 16, %s719_s18, [#allocation2] }
  0x2b   :  { %686 = dma.done.wait [#allocation2], 64 }
  0x2c   :  { %687 = vsyncadd [#allocation2], 4294967232 }
  0x2d   :  { %30 = sfence }
  0x2e   :  { %31 = vsyncpa [#allocation9], 0 }
  0x2f   :  { %33 = vsyncpa [#allocation9 + $0x1], 0  ;;  %s778_s19 = smov 0   ;;  %s780_s20 = smov 0  }
  0x30   :  { %s782_s4 = smov 0   ;;  %s784_s21 = smov 0  }
  0x31   :  { %s786_s22 = smov 0   ;;  %s788_s23 = smov 0  }
  0x32 LB: > { %s499_s24 = sadd.s32 4294967295, %s714_s23   ;;  %s500_s25 = sadd.s32 4294967294, %s714_s23   ;;  %s714_s23 = sphi %s788_s23, %s39_s23   ;;  %s710_s22 = sphi %s786_s22, %s983_s22   ;;  %s706_s21 = sphi %s784_s21, %s982_s21   ;;  %s702_s4 = sphi %s782_s4, %s981_s4   ;;  %s698_s20 = sphi %s780_s20, %s980_s20   ;;  %s694_s19 = sphi %s778_s19, %s979_s19  }
  0x33   : > { %s51_s26 = sadd.s32 1, %s710_s22  ;;  %s142_s27 = sadd.s32 1, %s702_s4 }
  0x34   : > { %p53_p6 = scmp.ge.s32.totalorder %s51_s26, 2  ;;  %p152_p7 = scmp.ne.s32.totalorder %s702_s4, %s698_s20 }
  0x35   : > { %p153_p8 = scmp.eq.s32.totalorder %s499_s24, 1  ;;  %p158_p9 = scmp.ne.s32.totalorder %s698_s20, %s694_s19 }
  0x36   : > { %s985_s26 = smov (%p53_p6, %s51_s26), 0  ;;  %p159_p11 = scmp.eq.s32.totalorder %s500_s25, 1 }
  0x37   : > { %p818_p10 = por %p153_p8, %p152_p7  ;;  %s137_s29 = ssub.s32 %s710_s22, %s985_s26 }
  0x38   : > { %p509_p12 = scmp.ge.s32.totalorder %s714_s23, 1  ;;  %p140_p13 = scmp.eq.s32.totalorder %s137_s29, 0 }
  0x39   : > { %p825_p0 = por %p159_p11, %p158_p9  ;;  %p225_p1 = scmp.lt.s32.totalorder %s714_s23, 3 }
  0x3a   : > { %s831_s8 = scalar_select %p140_p13, %s702_s4, %s142_s27  }
  0x3b   : > { %p226_p2 = pnand %p509_p12, %p225_p1 }
  0x3c   : > { %p271_p3 = scmp.lt.s32.totalorder (!%p226_p2), %s706_s21, 1  ;;  %s279_s9 = sadd.s32 (!%p226_p2), 1, %s706_s21 }
  0x3d   : > { %229 = sbr.rel (%p226_p2) target bundleno = 106 (0x6a), region = 28  ;;  %p280_p4 = scmp.lt.s32.totalorder (!%p226_p2), %s279_s9, 0 }
  0x3e   : > { %s281_s0 = ssub.s32 (!%p226_p2), 0, %s279_s9  ;;  %s836_s1 = sld [smem:[#allocation3]] (!%p226_p2) }
  0x3f   : > { %s513_s11 = smin.u32 (!%p226_p2), %s281_s0, %s279_s9  ;;  %s518_s13 = sshll.u32 (!%p226_p2), %s706_s21, 1 }
  0x40   : > { %s283_s12 = sand.u32 (!%p226_p2), 1, %s513_s11   ;;  %s334_s14 = sld [smem:[#allocation4 + %s518_s13]] (!%p226_p2) }
  0x41   : > { %s284_s2 = ssub.s32 (!%p226_p2), 0, %s283_s12  ;;  %s342_s3 = sadd.s32 (!%p226_p2), 1, %s518_s13 }
  0x42   : > { %s272_s10 = scalar_select %p271_p3, %s706_s21, 1  ;;  %v325_v0 = vlaneseq }
  0x43   : > { %s987_s2 = smov (!%p280_p4, %s284_s2), %s283_s12  ;;  %s335_s17 = sld [smem:[#allocation5 + %s518_s13]] }
  0x44   : > { %p515_p5 = scmp.lt.s32.totalorder %s987_s2, 0  ;;  %s290_s15 = sadd.s32 2, %s987_s2  ;;  %v326_v1 = vand.u32 127, %v325_v0  ;;  %v331_v2 = vshrl.u32 %v325_v0, 7  ;;  %v320_v10 = vstv %s836_s1 }
  0x45   : > { %s524_s16 = sshll.u32 %s272_s10, 4  ;;  %s839_s18 = sld [smem:[#allocation4 + %s342_s3]] }
  0x46   : > { %s989_s15 = smov (!%p515_p5, %s290_s15), %s987_s2  ;;  %s344_s24 = sld [smem:[#allocation5 + %s342_s3]]  ;;  %v336_v3 = vstv %s334_s14  ;;  %v332_v12 = vadd.s32 8, %v331_v2 }
  0x47   : > { %p292_p6 = scmp.lt.s32.totalorder %s989_s15, 1  ;;  %s278_s29 = scalar_lea.vmem %s961_s5, %s524_s16  ;;  %vm853_vm0 = vcmp.ge.s32.totalorder %v326_v1, %v336_v3 }
  0x48   : > { %s844_s9 = sld [smem:[#allocation6 + %s518_s13]]  ;;  %v313_v4 = vld [vmem:[%s278_s29] sm:$0xff]  ;;  %v314_v8 = vld [vmem:[%s278_s29 + $0x8] sm:$0xff]  ;;  %s526_s27 = sshll.u32 %s706_s21, 8 }
  0x49   : > { %s991_s15 = smov (!%p292_p6, %s989_s15), 1  ;;  %s338_s10 = sadd.s32 %s335_s17, %s334_s14 }
  0x4a   : > { %s846_s0 = sld [smem:[#allocation7 + %s518_s13]]  ;;  %s525_s11 = sshll.u32 %s991_s15, 4  ;;  %v339_v5 = vstv %s338_s10 }
  0x4b   : > { %s848_s12 = sld [smem:[#allocation6 + %s342_s3]]  ;;  %s299_s16 = scalar_lea.vmem %s962_s6, %s525_s11  ;;  %vm340_vm1 = vcmp.lt.s32.totalorder %v326_v1, %v339_v5  ;;  %v345_v7 = vstv %s839_s18 }
  0x4c   : > { %s364_s14 = sld [smem:[#allocation7 + %s342_s3]]  ;;  %s268_s13 = sand.u32 1, %s698_s20   ;;  %v315_v9 = vld [vmem:[%s299_s16] sm:$0xff]  ;;  %vm346_vm2 = vcmp.ge.s32.totalorder %v326_v1, %v345_v7  ;;  %v316_v11 = vld [vmem:[%s299_s16 + $0x8] sm:$0xff]  ;;  %vm864_vm3 = vmand %vm853_vm0, %vm340_vm1 }
  0x4d   : > { %s347_s15 = sadd.s32 %s344_s24, %s839_s18  ;;  %v318_v13 = vsub.f32 %v313_v4, %v315_v9  ;;  %v319_v17 = vsub.f32 %v314_v8, %v316_v11  ;;  %s510_s3 = sshll.u32 %s268_s13, 4 }
  0x4e   : > { %v348_v14 = vstv %s347_s15  ;;  %v354_v15 = vstv %s844_s9  ;;  %s270_s18 = scalar_lea.vmem [#allocation8], %s510_s3  ;;  %s914_s10 = scalar_lea.sflag [#allocation9], %s268_s13 }
  0x4f   : > { %vm349_vm4 = vcmp.lt.s32.totalorder %v326_v1, %v348_v14  ;;  %v321_v18 = vmul.f32 %v320_v10, %v318_v13  ;;  %vm355_vm6 = vcmp.ge.s32.totalorder %v331_v2, %v354_v15  ;;  %vm356_vm7 = vcmp.ge.s32.totalorder %v332_v12, %v354_v15  ;;  %s403_s24 = sshll.u32 %s270_s18, 4  ;;  %s720_s11 = smov [#allocation8]   ;;  %s898_s24 = int_to_ptr.vmem [resolvable:$true] %s403_s24 }
  0x50   : > { %vm870_vm5 = vmand %vm346_vm2, %vm349_vm4  ;;  %s357_s1 = sadd.s32 %s846_s0, %s844_s9  ;;  %v322_v24 = vmul.f32 %v320_v10, %v319_v17  ;;  %s905_s9 = scalar_lea.hbm %s963_s7, %s526_s27 }
  0x51   : > { %v358_v20 = vstv %s357_s1  ;;  %v365_v21 = vstv %s848_s12  ;;  %vm351_vm8 = vmor %vm864_vm3, %vm870_vm5  ;;  %v323_v25 = vadd.f32 %v321_v18, %v315_v9  ;;  %s636_s0 = scalar_lea.vmem %s898_s24, 256 }
  0x52   : > { %vm359_vm9 = vcmp.lt.s32.totalorder %v331_v2, %v358_v20  ;;  %vm366_vm10 = vcmp.ge.s32.totalorder %v331_v2, %v365_v21  ;;  %s368_s17 = sadd.s32 %s364_s14, %s848_s12  ;;  %vm360_vm12 = vcmp.lt.s32.totalorder %v332_v12, %v358_v20  ;;  %vm367_vm0 = vcmp.ge.s32.totalorder %v332_v12, %v365_v21  ;;  %p637_p7 = scmp.ne.s32.totalorder %s898_s24, %s636_s0 }
  0x53   : > { %vm882_vm11 = vmand %vm355_vm6, %vm359_vm9  ;;  %v369_v23 = vstv %s368_s17  ;;  %v324_v27 = vadd.f32 %v322_v24, %v316_v11  ;;  %s640_s12 = sshll.u32 %s720_s11, 4  ;;  %s641_s12 = int_to_ptr.vmem [resolvable:$false] %s640_s12 }
  0x54   : > { %vm370_vm13 = vcmp.lt.s32.totalorder %v331_v2, %v369_v23  ;;  %vm886_vm14 = vmand %vm356_vm7, %vm360_vm12  ;;  %vm371_vm1 = vcmp.lt.s32.totalorder %v332_v12, %v369_v23  ;;  %p638_p8 = pnand %p637_p7, %p818_p10  ;;  %s642_s2 = scalar_lea.vmem %s641_s12, 512 }
  0x55   : > { %vm372_vm15 = vmand %vm366_vm10, %vm370_vm13  ;;  %p643_p11 = scmp.lt.s32.totalorder %s898_s24, %s641_s12  ;;  %p644_p12 = scmp.lt.s32.totalorder %s642_s2, %s636_s0 }
  0x56   : > { %vm374_vm2 = vmor %vm882_vm11, %vm372_vm15  ;;  %p639_p9 = pneg %p638_p8 }
  0x57   : > { %vm382_vm4 = vmor %vm351_vm8, %vm374_vm2  ;;  %p645_p13 = por %p644_p12, %p643_p11 }
  0x58   : > { %v384_v28 = vsel %vm382_vm4, 0.0, %v323_v25  ;;  %vm373_vm6 = vmand %vm367_vm0, %vm371_vm1 }
  0x59   : > { %386 = vst [vmem:[%s270_s18] sm:$0xff] %v384_v28  ;;  %vm375_vm7 = vmor %vm886_vm14, %vm373_vm6  ;;  %p646_p1 = pnand %p645_p13, %p639_p9 }
  0x5a   : > { %vm383_vm9 = vmor %vm351_vm8, %vm375_vm7 }
  0x5b   : > { %v385_v29 = vsel %vm383_vm9, 0.0, %v324_v27 }
  0x5c   : > { %387 = vst [vmem:[%s270_s18 + $0x8] sm:$0xff] %v385_v29 }
  0x5d   : > { %649 = shalt.err (!%p646_p1)
}
  0x5e   : > { %s650_s25 = scalar_lea.hbm %s905_s9, 256  ;;  %s654_s13 = scalar_lea.hbm %s963_s7, 512 }
  0x5f   : > { %p651_p2 = scmp.ne.s32.totalorder %s905_s9, %s650_s25  ;;  %p655_p5 = scmp.lt.s32.totalorder %s905_s9, %s963_s7 }
  0x60   : > { %p656_p6 = scmp.lt.s32.totalorder %s654_s13, %s650_s25 }
  0x61   : > { %p652_p3 = pnand %p651_p2, %p818_p10 }
  0x62   : > { %p657_p7 = por %p656_p6, %p655_p5 }
  0x63   : > { %p653_p4 = pneg %p652_p3 }
  0x65   : > { %p658_p8 = pnand %p657_p7, %p653_p4 }
  0x67   : > { %661 = shalt.err (!%p658_p8)
}
  0x68   : > { %s721_s1 = smov 128   ;;  %s722_s17 = smov 8  }
  0x69   : > { %527 = dma.vmem_to_hbm [thread:$0]  (%p818_p10), %s898_s24, 256, %s905_s9, %s914_s10, %s721_s1, %s721_s1, %s722_s17  }
  0x6a PF: > { %p533_p9 = scmp.ge.s32.totalorder %s714_s23, 2  ;;  %s418_s18 = sand.u32 1, %s694_s19  }
  0x6b   : > { %s419_s27 = scalar_lea.sflag [#allocation9], %s418_s18 }
  0x6c   : > { %p530_p11 = pnand %p533_p9, %p825_p0 }
  0x6e   : > { %p531_p12 = pneg %p530_p11 }
  0x70   : > { %689 = dma.done.wait (%p531_p12), %s419_s27, 256  }
  0x71   : > { %691 = vsyncadd (%p531_p12), %s419_s27, 4294967040  ;;  %s39_s23 = sadd.s32 1, %s714_s23   ;;  %s979_s19 = smov %s698_s20 }
  0x72   : > { %p36_p13 = scmp.ge.s32.totalorder %s39_s23, 4   ;;  %s980_s20 = smov %s702_s4 }
  0x73   : > { %s981_s4 = smov %s831_s8  ;;  %s982_s21 = smov %s710_s22 }
  0x74   : > { %s983_s22 = smov %s985_s26  ;;  %38 = sbr.rel (!%p36_p13) target bundleno = 50 (0x32), region = 66 }
  0x79   :  { %424 = vsyncpa [#allocation9], 1 }
  0x7a   :  { %426 = vsyncpa [#allocation9 + $0x1], 1 }

// kernel: branch_1_fun.1
= control target key start
LH: loop header
LB: loop body
LE: loop exit
PB: predicated region body
PF: predicated region fallthrough
CT: control target
= control target key end

     0   :  { %s826_s0 = inlined_call_operand.vmem [shape: s32[4], index: 0, kind: input, shape index: {}]   ;;  %s827_s4 = inlined_call_operand.hbm [shape: f32[2,16,128], index: 4, kind: input, shape index: {}, may-alias: {4,5}]   ;;  %s828_s5 = inlined_call_operand.hbm [shape: f32[2,16,128], index: 5, kind: output, shape index: {}, may-alias: {4,5}]   ;;  %s829_s1 = inlined_call_operand.vmem [shape: s32[4], index: 1, kind: input, shape index: {}]   ;;  %s830_s2 = inlined_call_operand.vmem [shape: s32[4], index: 2, kind: input, shape index: {}]   ;;  %s831_s3 = inlined_call_operand.vmem [shape: s32[4], index: 3, kind: input, shape index: {}]  }
   0x1   :  { %s10_s20 = sshll.u32 %s826_s0, 4  ;;  %s14_s23 = sshll.u32 %s829_s1, 4  ;;  %s11_s20 = int_to_ptr.vmem [resolvable:$true] %s10_s20  ;;  %s15_s23 = int_to_ptr.vmem [resolvable:$true] %s14_s23 }
   0x2   :  { %s427_s24 = scalar_lea.vmem %s11_s20, 16  ;;  %p432_p1 = scmp.lt.s32.totalorder %s11_s20, %s11_s20 }
   0x3   :  { %p428_p0 = scmp.ne.s32.totalorder %s11_s20, %s427_s24  ;;  %p433_p2 = scmp.lt.s32.totalorder %s427_s24, %s427_s24 }
   0x5   :  { %p434_p3 = por %p433_p2, %p432_p1 }
   0x7   :  { %p435_p4 = pnand %p434_p3, %p428_p0 }
   0x9   :  { %438 = shalt.err (!%p435_p4)  }
   0xa   :  { %s587_s25 = smov [#allocation3]   ;;  %s439_s26 = scalar_lea.vmem %s15_s23, 16 }
   0xb   :  { %13 = dma.vmem_to_smem %s11_s20, 16, %s587_s25, [#allocation2] }
   0xc   :  { %p440_p5 = scmp.ne.s32.totalorder %s15_s23, %s439_s26  ;;  %p444_p6 = scmp.lt.s32.totalorder %s15_s23, %s15_s23 }
   0xd   :  { %p445_p7 = scmp.lt.s32.totalorder %s439_s26, %s439_s26 }
   0xf   :  { %p446_p8 = por %p445_p7, %p444_p6 }
  0x11   :  { %p447_p9 = pnand %p446_p8, %p440_p5 }
  0x13   :  { %450 = shalt.err (!%p447_p9)  }
  0x14   :  { %s588_s0 = smov [#allocation4]   ;;  %s18_s28 = sshll.u32 %s830_s2, 4  ;;  %s19_s28 = int_to_ptr.vmem [resolvable:$true] %s18_s28 }
  0x15   :  { %17 = dma.vmem_to_smem %s15_s23, 16, %s588_s0, [#allocation2] }
  0x16   :  { %s22_s6 = sshll.u32 %s831_s3, 4  ;;  %s451_s7 = scalar_lea.vmem %s19_s28, 16  ;;  %s23_s6 = int_to_ptr.vmem [resolvable:$true] %s22_s6 }
  0x17   :  { %p452_p10 = scmp.ne.s32.totalorder %s19_s28, %s451_s7  ;;  %p456_p11 = scmp.lt.s32.totalorder %s19_s28, %s19_s28 }
  0x18   :  { %p457_p12 = scmp.lt.s32.totalorder %s451_s7, %s451_s7 }
  0x1a   :  { %p458_p13 = por %p457_p12, %p456_p11 }
  0x1c   :  { %p459_p0 = pnand %p458_p13, %p452_p10 }
  0x1e   :  { %462 = shalt.err (!%p459_p0)  }
  0x1f   :  { %s589_s8 = smov [#allocation5]   ;;  %s463_s9 = scalar_lea.vmem %s23_s6, 16 }
  0x20   :  { %21 = dma.vmem_to_smem %s19_s28, 16, %s589_s8, [#allocation2] }
  0x21   :  { %p464_p1 = scmp.ne.s32.totalorder %s23_s6, %s463_s9  ;;  %p468_p2 = scmp.lt.s32.totalorder %s23_s6, %s23_s6 }
  0x22   :  { %p469_p3 = scmp.lt.s32.totalorder %s463_s9, %s463_s9 }
  0x24   :  { %p470_p4 = por %p469_p3, %p468_p2 }
  0x26   :  { %p471_p5 = pnand %p470_p4, %p464_p1 }
  0x28   :  { %474 = shalt.err (!%p471_p5)  }
  0x29   :  { %s590_s2 = smov [#allocation6]  }
  0x2a   :  { %25 = dma.vmem_to_smem %s23_s6, 16, %s590_s2, [#allocation2] }
  0x2b   :  { %553 = dma.done.wait [#allocation2], 64 }
  0x2c   :  { %554 = vsyncadd [#allocation2], 4294967232 }
  0x2d   :  { %27 = sfence }
  0x2e   :  { %28 = vsyncpa [#allocation8], 0 }
  0x2f   :  { %30 = vsyncpa [#allocation8 + $0x1], 0 }
  0x30   :  { %31 = vsyncpa [#allocation9], 0 }
  0x31   :  { %33 = vsyncpa [#allocation9 + $0x1], 0  ;;  %s639_s3 = smov 0   ;;  %s641_s10 = smov 0  }
  0x32   :  { %s643_s11 = smov 0   ;;  %s645_s12 = smov 0  }
  0x33   :  { %s647_s13 = smov 0   ;;  %s649_s14 = smov 0  }
  0x34 LB: > { %s339_s15 = sadd.s32 4294967295, %s585_s14   ;;  %s340_s16 = sadd.s32 4294967294, %s585_s14   ;;  %s585_s14 = sphi %s649_s14, %s39_s14   ;;  %s581_s13 = sphi %s647_s13, %s848_s13   ;;  %s577_s12 = sphi %s645_s12, %s847_s12   ;;  %s573_s11 = sphi %s643_s11, %s846_s11   ;;  %s569_s10 = sphi %s641_s10, %s845_s10   ;;  %s565_s3 = sphi %s639_s3, %s844_s3  }
  0x35   : > { %s51_s17 = sadd.s32 1, %s581_s13  ;;  %s60_s18 = sadd.s32 1, %s573_s11 }
  0x36   : > { %p53_p6 = scmp.ge.s32.totalorder %s51_s17, 2  ;;  %p67_p7 = scmp.ne.s32.totalorder %s573_s11, %s569_s10 }
  0x37   : > { %p68_p8 = scmp.eq.s32.totalorder %s585_s14, 0  ;;  %p73_p9 = scmp.ne.s32.totalorder %s569_s10, %s565_s3 }
  0x38   : > { %s850_s17 = smov (%p53_p6, %s51_s17), 0  ;;  %p74_p11 = scmp.eq.s32.totalorder %s339_s15, 0 }
  0x39   : > { %p680_p10 = por %p68_p8, %p67_p7  ;;  %s55_s20 = ssub.s32 %s581_s13, %s850_s17 }
  0x3a   : > { %p99_p12 = scmp.eq.s32.totalorder %s339_s15, 1  ;;  %p58_p13 = scmp.eq.s32.totalorder %s55_s20, 0 }
  0x3b   : > { %p686_p0 = por %p74_p11, %p73_p9  ;;  %p105_p2 = scmp.eq.s32.totalorder %s340_s16, 1 }
  0x3c   : > { %p690_p1 = por %p99_p12, %p67_p7  ;;  %p369_p5 = scmp.lt.s32.totalorder %s585_s14, 2 }
  0x3d   : > { %s695_s23 = scalar_select %p58_p13, %s573_s11, %s60_s18  }
  0x3e   : > { %p697_p3 = por %p105_p2, %p73_p9  ;;  %s125_s25 = sand.u32 1, %s573_s11  }
  0x3f   : > { %s343_s26 = sshll.u32 %s125_s25, 4  ;;  %s355_s0 = sshll.u32 %s581_s13, 8 }
  0x40   : > { %s136_s28 = scalar_lea.hbm %s827_s4, %s355_s0  ;;  %s129_s29 = scalar_lea.vmem [#allocation7], %s343_s26 }
  0x41   : > { %s137_s30 = sshll.u32 %s129_s29, 4  ;;  %p710_p6 = pnand %p369_p5, %p680_p10  ;;  %s138_s30 = int_to_ptr.vmem [resolvable:$true] %s137_s30 }
  0x42   : > { %p346_p7 = scmp.ge.s32.totalorder %s585_s14, 1  ;;  %s126_s7 = scalar_lea.sflag [#allocation8], %s125_s25 }
  0x43   : > { %p477_p8 = pneg %p710_p6  ;;  %s488_s8 = scalar_lea.vmem %s138_s30, 256 }
  0x44   : > { %p489_p9 = scmp.ne.s32.totalorder %s138_s30, %s488_s8  ;;  %s591_s9 = smov [#allocation7]  }
  0x45   : > { %s493_s2 = sshll.u32 %s591_s9, 4  ;;  %s494_s2 = int_to_ptr.vmem [resolvable:$false] %s493_s2 }
  0x46   : > { %p491_p11 = pnand %p489_p9, %p477_p8  ;;  %s495_s15 = scalar_lea.vmem %s494_s2, 512 }
  0x47   : > { %p496_p13 = scmp.lt.s32.totalorder %s138_s30, %s494_s2  ;;  %p497_p2 = scmp.lt.s32.totalorder %s495_s15, %s488_s8 }
  0x48   : > { %p492_p12 = pneg %p491_p11 }
  0x49   : > { %p498_p4 = por %p497_p2, %p496_p13 }
  0x4b   : > { %p499_p10 = pnand %p498_p4, %p492_p12 }
  0x4d   : > { %502 = shalt.err (!%p499_p10)
}
  0x4e   : > { %s592_s16 = smov 128   ;;  %s593_s18 = smov 8  }
  0x4f   : > { %364 = dma.hbm_to_vmem [thread:$0]  (!%p710_p6), %s136_s28, 256, %s138_s30, %s126_s7, %s592_s16, %s592_s16, %s593_s18  }
  0x50   : > { %p145_p5 = scmp.lt.s32.totalorder %s585_s14, 3 }
  0x52   : > { %p146_p8 = pnand %p346_p7, %p145_p5 }
  0x53   : > { %s723_s19 = sand.u32 (!%p146_p8), 1, %s569_s10  }
  0x54   : > { %149 = sbr.rel (%p146_p8) target bundleno = 128 (0x80), region = 24  ;;  %s347_s20 = sshll.u32 (!%p146_p8), %s723_s19, 4 }
  0x55   : > { %s152_s25 = scalar_lea.sflag (!%p146_p8), [#allocation8], %s723_s19  ;;  %s729_s26 = scalar_lea.vmem (!%p146_p8), [#allocation7], %s347_s20 }
  0x59   : > { %556 = dma.done.wait (%p686_p0), %s152_s25, 256  }
  0x5a   : > { %558 = vsyncadd (%p686_p0), %s152_s25, 4294967040  ;;  %s349_s0 = sshll.u32 %s577_s12, 1  ;;  %v174_v0 = vlaneseq  ;;  %v182_v15 = vld [vmem:[%s729_s26] sm:$0xff]  ;;  %s173_s18 = scalar_lea.vmem [#allocation10], %s347_s20  ;;  %v183_v17 = vld [vmem:[%s729_s26 + $0x8] sm:$0xff] }
  0x5b   : > { %s185_s1 = sld [smem:[#allocation3 + %s349_s0]]  ;;  %s193_s27 = sadd.s32 1, %s349_s0 }
  0x5c   : > { %s186_s28 = sld [smem:[#allocation4 + %s349_s0]]  ;;  %v175_v1 = vand.u32 127, %v174_v0  ;;  %v180_v2 = vshrl.u32 %v174_v0, 7  ;;  %s254_s25 = sshll.u32 %s173_s18, 4  ;;  %s765_s25 = int_to_ptr.vmem [resolvable:$true] %s254_s25 }
  0x5d   : > { %s194_s29 = sld [smem:[#allocation3 + %s193_s27]]  ;;  %s240_s26 = scalar_lea.sflag [#allocation9], %s723_s19 }
  0x5e   : > { %s195_s30 = sld [smem:[#allocation4 + %s193_s27]]  ;;  %v181_v6 = vadd.s32 8, %v180_v2 }
  0x5f   : > { %s203_s6 = sld [smem:[#allocation5 + %s349_s0]] }
  0x60   : > { %s204_s7 = sld [smem:[#allocation6 + %s349_s0]]  ;;  %s356_s0 = sshll.u32 %s577_s12, 8 }
  0x61   : > { %v187_v3 = vstv %s185_s1  ;;  %s736_s8 = sld [smem:[#allocation5 + %s193_s27]] }
  0x62   : > { %vm188_vm0 = vcmp.ge.s32.totalorder %v175_v1, %v187_v3  ;;  %s189_s9 = sadd.s32 %s186_s28, %s185_s1  ;;  %s215_s21 = sld [smem:[#allocation6 + %s193_s27]] }
  0x63   : > { %v190_v4 = vstv %s189_s9  ;;  %v196_v5 = vstv %s194_s29  ;;  %s773_s1 = scalar_lea.hbm %s828_s5, %s356_s0  ;;  %s503_s27 = scalar_lea.vmem %s765_s25, 256 }
  0x64   : > { %vm191_vm1 = vcmp.lt.s32.totalorder %v175_v1, %v190_v4  ;;  %vm197_vm2 = vcmp.ge.s32.totalorder %v175_v1, %v196_v5  ;;  %s198_s2 = sadd.s32 %s195_s30, %s194_s29  ;;  %p504_p0 = scmp.ne.s32.totalorder %s765_s25, %s503_s27 }
  0x65   : > { %vm738_vm3 = vmand %vm188_vm0, %vm191_vm1  ;;  %v199_v8 = vstv %s198_s2  ;;  %v205_v9 = vstv %s203_s6  ;;  %s594_s28 = smov [#allocation10]  }
  0x66   : > { %vm200_vm4 = vcmp.lt.s32.totalorder %v175_v1, %v199_v8  ;;  %vm206_vm5 = vcmp.ge.s32.totalorder %v180_v2, %v205_v9  ;;  %s208_s15 = sadd.s32 %s204_s7, %s203_s6  ;;  %vm207_vm7 = vcmp.ge.s32.totalorder %v181_v6, %v205_v9  ;;  %p505_p4 = pnand %p504_p0, %p690_p1 }
  0x67   : > { %vm742_vm6 = vmand %vm197_vm2, %vm200_vm4  ;;  %v209_v11 = vstv %s208_s15  ;;  %v216_v12 = vstv %s736_s8  ;;  %s507_s29 = sshll.u32 %s594_s28, 4  ;;  %s508_s29 = int_to_ptr.vmem [resolvable:$false] %s507_s29 }
  0x68   : > { %vm202_vm8 = vmor %vm738_vm3, %vm742_vm6  ;;  %vm210_vm9 = vcmp.lt.s32.totalorder %v180_v2, %v209_v11  ;;  %vm217_vm10 = vcmp.ge.s32.totalorder %v180_v2, %v216_v12  ;;  %s219_s16 = sadd.s32 %s215_s21, %s736_s8  ;;  %vm211_vm11 = vcmp.lt.s32.totalorder %v181_v6, %v209_v11  ;;  %vm218_vm0 = vcmp.ge.s32.totalorder %v181_v6, %v216_v12  ;;  %p506_p6 = pneg %p505_p4 }
  0x69   : > { %vm212_vm12 = vmand %vm206_vm5, %vm210_vm9  ;;  %v220_v13 = vstv %s219_s16  ;;  %s509_s30 = scalar_lea.vmem %s508_s29, 512  ;;  %p510_p7 = scmp.lt.s32.totalorder %s765_s25, %s508_s29 }
  0x6a   : > { %vm221_vm13 = vcmp.lt.s32.totalorder %v180_v2, %v220_v13  ;;  %vm752_vm14 = vmand %vm207_vm7, %vm211_vm11  ;;  %vm222_vm1 = vcmp.lt.s32.totalorder %v181_v6, %v220_v13  ;;  %p511_p9 = scmp.lt.s32.totalorder %s509_s30, %s503_s27 }
  0x6b   : > { %vm223_vm15 = vmand %vm217_vm10, %vm221_vm13 }
  0x6c   : > { %vm225_vm2 = vmor %vm212_vm12, %vm223_vm15  ;;  %p512_p11 = por %p511_p9, %p510_p7 }
  0x6d   : > { %vm233_vm4 = vmor %vm202_vm8, %vm225_vm2 }
  0x6e   : > { %v235_v16 = vsel %vm233_vm4, 0.0, %v182_v15  ;;  %vm224_vm5 = vmand %vm218_vm0, %vm222_vm1  ;;  %p513_p12 = pnand %p512_p11, %p506_p6 }
  0x6f   : > { %237 = vst [vmem:[%s173_s18] sm:$0xff] %v235_v16  ;;  %vm226_vm7 = vmor %vm752_vm14, %vm224_vm5 }
  0x70   : > { %vm234_vm9 = vmor %vm202_vm8, %vm226_vm7 }
  0x71   : > { %v236_v18 = vsel %vm234_vm9, 0.0, %v183_v17 }
  0x72   : > { %238 = vst [vmem:[%s173_s18 + $0x8] sm:$0xff] %v236_v18 }
  0x73   : > { %516 = shalt.err (!%p513_p12)
}
  0x74   : > { %s517_s6 = scalar_lea.hbm %s773_s1, 256  ;;  %s521_s9 = scalar_lea.hbm %s828_s5, 512 }
  0x75   : > { %p518_p13 = scmp.ne.s32.totalorder %s773_s1, %s517_s6  ;;  %p522_p5 = scmp.lt.s32.totalorder %s773_s1, %s828_s5 }
  0x76   : > { %p523_p8 = scmp.lt.s32.totalorder %s521_s9, %s517_s6 }
  0x77   : > { %p519_p2 = pnand %p518_p13, %p690_p1 }
  0x78   : > { %p524_p0 = por %p523_p8, %p522_p5 }
  0x79   : > { %p520_p10 = pneg %p519_p2 }
  0x7b   : > { %p525_p4 = pnand %p524_p0, %p520_p10 }
  0x7d   : > { %528 = shalt.err (!%p525_p4)
}
  0x7e   : > { %s595_s15 = smov 128   ;;  %s596_s16 = smov 8  }
  0x7f   : > { %359 = dma.vmem_to_hbm [thread:$0]  (%p690_p1), %s765_s25, 256, %s773_s1, %s240_s26, %s595_s15, %s595_s15, %s596_s16  }
  0x80 PF: > { %s269_s18 = sand.u32 1, %s565_s3   ;;  %p843_p6 = scmp.ge.s32.totalorder %s585_s14, 2 }
  0x81   : > { %s270_s0 = scalar_lea.sflag [#allocation9], %s269_s18 }
  0x82   : > { %p366_p7 = pnand %p843_p6, %p697_p3 }
  0x84   : > { %p367_p9 = pneg %p366_p7 }
  0x86   : > { %560 = dma.done.wait (%p367_p9), %s270_s0, 256  }
  0x87   : > { %562 = vsyncadd (%p367_p9), %s270_s0, 4294967040  ;;  %s39_s14 = sadd.s32 1, %s585_s14   ;;  %s844_s3 = smov %s569_s10 }
  0x88   : > { %p36_p11 = scmp.ge.s32.totalorder %s39_s14, 4   ;;  %s845_s10 = smov %s573_s11 }
  0x89   : > { %s846_s11 = smov %s695_s23  ;;  %s847_s12 = smov %s581_s13 }
  0x8a   : > { %s848_s13 = smov %s850_s17  ;;  %38 = sbr.rel (!%p36_p11) target bundleno = 52 (0x34), region = 69 }
  0x8f   :  { %275 = vsyncpa [#allocation8], 1 }
  0x90   :  { %277 = vsyncpa [#allocation8 + $0x1], 1 }
  0x91   :  { %278 = vsyncpa [#allocation9], 1 }
  0x92   :  { %280 = vsyncpa [#allocation9 + $0x1], 1 }

</bundles_post_ra>
